<compile_context>
chip_gen: v5e
topology: v5e:2x2
jax: 0.10.0
libtpu: 0.0.40
codegen_flags: <defaults>
</compile_context>

<pallas_src>
import functools
import numpy as np

import jax
import jax.numpy as jnp
from jax import lax
from jax.experimental import pallas as pl
from jax.experimental.pallas import tpu as pltpu

_LANE = 128


def _cdiv(a, b):
    return -(-a // b)


def _round_up(x, m):
    return _cdiv(x, m) * m


# ----------------------------- Pallas kernel ------------------------------- #

def _lipchitz_partial_kernel(x_ref, t_ref, o_ref, *, n_chunks, tile_f, feat,
                             n_tiles_per_split, needs_mask, unroll):
    """Accumulate lane-parallel per-sample partial sums of (x - t).

    Grid: (split, feature_tile).  o_ref is this split's (B, 128) f32 partial
    block; it stays resident across the 'arbitrary' feature axis and doubles
    as the accumulator.  The single cross-lane reduce happens outside (JAX).
    """
    s = pl.program_id(0)
    f = pl.program_id(1)

    @pl.when(f == 0)
    def _init():
        o_ref[...] = jnp.zeros_like(o_ref)

    acc0 = o_ref[...]                      # one accumulator load per grid step

    def _unmasked_body(c, acc):
        lo = pl.multiple_of(c * _LANE, _LANE)
        xd = x_ref[:, pl.ds(lo, _LANE)].astype(jnp.float32)
        td = t_ref[:, pl.ds(lo, _LANE)].astype(jnp.float32)
        return acc + (xd - td)

    if not needs_mask:
        # Feature range tiles evenly across the whole grid: pure fast path.
        o_ref[...] = lax.fori_loop(0, n_chunks, _unmasked_body, acc0,
                                   unroll=unroll)
        return

    # Ragged / overhanging tiles exist somewhere in the grid.  Fully in-bounds
    # tiles take the unmasked path; tail tiles mask out columns >= feat (edge
    # blocks hold garbage past the array boundary, which is not sum-neutral).
    tile_start = (s * n_tiles_per_split + f) * tile_f
    is_full = tile_start + tile_f <= feat

    @pl.when(is_full)
    def _fast():
        o_ref[...] = lax.fori_loop(0, n_chunks, _unmasked_body, acc0,
                                   unroll=unroll)

    @pl.when(jnp.logical_not(is_full))
    def _tail():
        lane = lax.broadcasted_iota(jnp.int32, o_ref.shape, 1)  # hoisted

        def _masked_body(c, acc):
            lo = pl.multiple_of(c * _LANE, _LANE)
            xd = x_ref[:, pl.ds(lo, _LANE)].astype(jnp.float32)
            td = t_ref[:, pl.ds(lo, _LANE)].astype(jnp.float32)
            col = tile_start + lo + lane
            return acc + jnp.where(col < feat, xd - td, 0.0)

        o_ref[...] = lax.fori_loop(0, n_chunks, _masked_body, acc0,
                                   unroll=unroll)


# ------------------------------- glue (JAX) -------------------------------- #

def _vmem_limit_cap():
    """Generation-aware scoped-VMEM ceiling (v7x: 64 MiB physical per TC)."""
    try:
        info = pltpu.get_tpu_info()
        phys = int(getattr(info, "vmem_capacity_bytes", 128 << 20))
    except Exception:  # pragma: no cover - conservative fallback
        phys = 128 << 20
    if phys <= (64 << 20):          # v7x-class: leave compiler headroom
        return 44 << 20
    return 64 << 20                 # v5e / v6e: 128 MiB physical


def _pick_tile(batch, feat_arr, itemsize, vmem_cap, max_tile_f=None):
    """Lane-aligned feature tile, ~4 MiB per input block, capped by VMEM."""
    f128 = _round_up(feat_arr, _LANE)
    target_bytes = 4 << 20
    tile = (target_bytes // max(batch * itemsize, 1)) // _LANE * _LANE
    # 2 inputs x 2 pipeline buffers must fit comfortably in the VMEM budget.
    budget = int(0.6 * vmem_cap)
    tile_budget = (budget // max(4 * batch * itemsize, 1)) // _LANE * _LANE
    tile = max(_LANE, min(tile, tile_budget))
    if max_tile_f is not None:
        tile = max(_LANE, min(tile, _round_up(max_tile_f, _LANE)))
    return min(tile, f128)


def lipchitz_criterion(x, t, perm, reduction="sum", max_tile_f=None):
    assert reduction in ("sum", "mean", "none")
    if reduction == "none":
        # TODO(synk): reduction='none' keeps full (C,H,W) features through the
        # batch-diff; not implemented in this Pallas version.
        raise NotImplementedError("reduction='none' not implemented")

    batch = x.shape[0]
    feat = int(np.prod(x.shape[1:]))
    xf = x.reshape(batch, feat)
    tf_ = t.reshape(batch, feat)

    # No full-array jnp.pad (that costs a full extra HBM read+write and then
    # streams zeros).  Ragged tails are masked in-kernel.  Only the degenerate
    # feat < 128 case is padded (single vreg row, negligible).
    if feat < _LANE:
        pad = _LANE - feat
        xf = jnp.pad(xf, ((0, 0), (0, pad)))
        tf_ = jnp.pad(tf_, ((0, 0), (0, pad)))
    feat_arr = xf.shape[1]

    itemsize = xf.dtype.itemsize
    vmem_cap = _vmem_limit_cap()
    tile_f = _pick_tile(batch, feat_arr, itemsize, vmem_cap, max_tile_f)
    n_chunks = tile_f // _LANE

    n_tiles_total = _cdiv(feat_arr, tile_f)
    # Leading 'parallel' split axis: shards the feature stream across the two
    # TensorCores on v7x; on v5e/v6e (1 TC) it is just a 2-long serial loop.
    n_splits = 2 if n_tiles_total >= 2 else 1
    n_tiles_per_split = _cdiv(n_tiles_total, n_splits)
    needs_mask = (n_splits * n_tiles_per_split * tile_f) != feat_arr

    last_tile = n_tiles_total - 1

    def in_index_map(s, f):
        # Clamp fully-out-of-range tiles (uneven split overhang) to the last
        # valid block; the in-kernel column mask zeroes their contribution.
        return (0, jnp.minimum(s * n_tiles_per_split + f, last_tile))

    block_bytes = batch * tile_f * itemsize
    needed = 2 * 2 * block_bytes + n_splits * batch * _LANE * 4 + (1 << 16)
    vmem_limit = int(min(max(2 * needed, 16 << 20), vmem_cap))

    kernel = functools.partial(
        _lipchitz_partial_kernel, n_chunks=n_chunks, tile_f=tile_f,
        feat=feat_arr, n_tiles_per_split=n_tiles_per_split,
        needs_mask=needs_mask, unroll=min(8, n_chunks))

    partials = pl.pallas_call(
        kernel,
        out_shape=jax.ShapeDtypeStruct((n_splits, batch, _LANE), jnp.float32),
        grid=(n_splits, n_tiles_per_split),
        in_specs=[
            # TODO(synk): if an xprof trace on v7x shows inter-step DMA gaps,
            # add pipeline_mode=pl.Buffered(3) to these two specs and re-sweep.
            pl.BlockSpec((batch, tile_f), in_index_map),
            pl.BlockSpec((batch, tile_f), in_index_map),
        ],
        out_specs=pl.BlockSpec((None, batch, _LANE), lambda s, f: (s, 0, 0)),
        compiler_params=pltpu.CompilerParams(
            dimension_semantics=("parallel", "arbitrary"),
            vmem_limit_bytes=vmem_limit,
        ),
    )(xf, tf_)

    # O(B) epilogue in plain JAX (replaces the former resident (B, B) matmul
    # epilogue: negligible work, no O(B^2) VMEM pressure, scales with batch).
    scale = (1.0 / feat) if reduction == "mean" else 1.0
    u = jnp.sum(partials, axis=(0, 2)) * scale                 # (B,) = xi - ti
    fwd = jnp.roll(u, -1) - u                                  # forward diff
    up = u[perm]
    bwd = jnp.concatenate([up[1:], up[-1:]]) - up              # backward diff
    d = fwd - bwd
    return jnp.mean(d * d)


# --------------------------- pure-JAX reference ----------------------------- #

def lipchitz_criterion_ref(x, t, perm, reduction="sum"):
    axes = tuple(range(1, x.ndim))
    if reduction == "sum":
        xi, ti = jnp.sum(x, axis=axes), jnp.sum(t, axis=axes)
    else:
        xi, ti = jnp.mean(x, axis=axes), jnp.mean(t, axis=axes)
    fwd_x = jnp.concatenate([xi[1:], xi[:1]]) - xi
    fwd_t = jnp.concatenate([ti[1:], ti[:1]]) - ti
    xp, tp = xi[perm], ti[perm]
    bwd_x = jnp.concatenate([xp[1:], xp[-1:]]) - xp
    bwd_t = jnp.concatenate([tp[1:], tp[-1:]]) - tp
    d = (fwd_x - bwd_x) - (fwd_t - bwd_t)
    return jnp.mean(d ** 2)


# --------------------------------- main ------------------------------------ #

if __name__ == "__main__":
    key = jax.random.PRNGKey(0)

    cases = [
        # (shape, reduction, max_tile_f)
        ((8, 4, 16, 16), "sum", None),    # aligned feat=1024, single big tile
        ((8, 4, 16, 16), "mean", None),
        ((8, 4, 16, 16), "sum", 128),     # multi-tile + 2-way split, aligned
        ((6, 3, 10, 10), "sum", 128),     # ragged feat=300, uneven split (mask)
    ]

    ok = True
    for i, (shape, reduction, max_tile_f) in enumerate(cases):
        k1, k2, k3 = jax.random.split(jax.random.fold_in(key, i), 3)
        x = jax.random.normal(k1, shape, dtype=jnp.float32)
        t = jax.random.normal(k2, shape, dtype=jnp.float32)
        # Deterministic stand-in for torch.randperm(len(input)).
        perm = jax.random.permutation(k3, shape[0]).astype(jnp.int32)

        out = jax.block_until_ready(
            lipchitz_criterion(x, t, perm, reduction, max_tile_f=max_tile_f))
        ref = jax.block_until_ready(
            lipchitz_criterion_ref(x, t, perm, reduction))
        if not np.allclose(np.asarray(out), np.asarray(ref),
                           rtol=1e-4, atol=1e-5):
            ok = False
            print(f"MISMATCH case={i} shape={shape} reduction={reduction} "
                  f"kernel={out} ref={ref}")

    if ok:
        print("KERNEL_OK")
</pallas_src>

<mosaic_0001>
module attributes {stable_mosaic.version = 11 : i64} {
  func.func @_lipchitz_partial_kernel(%arg0: i32, %arg1: i32, %arg2: memref<8x1024xf32, #tpu.memory_space<vmem>>, %arg3: memref<8x1024xf32, #tpu.memory_space<vmem>>, %arg4: memref<1x8x128xf32, #tpu.memory_space<vmem>>) attributes {dimension_semantics = [#tpu.dimension_semantics<parallel>, #tpu.dimension_semantics<arbitrary>], iteration_bounds = array<i64: 1, 1>, scalar_prefetch = 0 : i64, scratch_operands = 0 : i64, tpu.core_type = #tpu.core_type<tc>, window_params = [{transform_indices = @transform_0, window_bounds = array<i64: 8, 1024>}, {transform_indices = @transform_1, window_bounds = array<i64: 8, 1024>}, {transform_indices = @transform_2, window_bounds = array<i64: 1, 8, 128>}]} {
    %c0_i32 = arith.constant 0 : i32
    %0 = arith.cmpi eq, %arg1, %c0_i32 : i32
    %1 = arith.extui %0 : i1 to i32
    %c0_i32_0 = arith.constant 0 : i32
    %2 = arith.cmpi ne, %1, %c0_i32_0 : i32
    scf.if %2 {
      %cst = arith.constant 0.000000e+00 : f32
      %72 = vector.broadcast %cst : f32 to vector<8x128xf32>
      %c0_30 = arith.constant 0 : index
      %c0_31 = arith.constant 0 : index
      %c0_32 = arith.constant 0 : index
      %73 = vector.load %arg4[%c0_30, %c0_31, %c0_32] : memref<1x8x128xf32, #tpu.memory_space<vmem>>, vector<1x8x128xf32>
      %74 = vector.shape_cast %73 : vector<1x8x128xf32> to vector<8x128xf32>
      %75 = vector.shape_cast %72 : vector<8x128xf32> to vector<1x8x128xf32>
      tpu.vector_store %arg4[%c0_30, %c0_31, %c0_32], %75 {strides = array<i32>} : memref<1x8x128xf32, #tpu.memory_space<vmem>>, vector<1x8x128xf32>,
    } else {
    }
    %c0 = arith.constant 0 : index
    %c0_1 = arith.constant 0 : index
    %c0_2 = arith.constant 0 : index
    %3 = vector.load %arg4[%c0, %c0_1, %c0_2] : memref<1x8x128xf32, #tpu.memory_space<vmem>>, vector<1x8x128xf32>
    %4 = vector.shape_cast %3 : vector<1x8x128xf32> to vector<8x128xf32>
    %c0_i32_3 = arith.constant 0 : i32
    %c128_i32 = arith.constant 128 : i32
    %5 = arith.muli %c0_i32_3, %c128_i32 : i32
    %6 = tpu.assume_multiple %5, 128 : i32
    %c0_4 = arith.constant 0 : index
    %7 = arith.index_cast %6 : i32 to index
    %8 = vector.load %arg2[%c0_4, %7] : memref<8x1024xf32, #tpu.memory_space<vmem>>, vector<8x128xf32>
    %c0_5 = arith.constant 0 : index
    %9 = arith.index_cast %6 : i32 to index
    %10 = vector.load %arg3[%c0_5, %9] : memref<8x1024xf32, #tpu.memory_space<vmem>>, vector<8x128xf32>
    %11 = arith.subf %8, %10 : vector<8x128xf32>
    %12 = arith.addf %4, %11 : vector<8x128xf32>
    %c1_i32 = arith.constant 1 : i32
    %c128_i32_6 = arith.constant 128 : i32
    %13 = arith.muli %c1_i32, %c128_i32_6 : i32
    %14 = tpu.assume_multiple %13, 128 : i32
    %c0_7 = arith.constant 0 : index
    %15 = arith.index_cast %14 : i32 to index
    %16 = vector.load %arg2[%c0_7, %15] : memref<8x1024xf32, #tpu.memory_space<vmem>>, vector<8x128xf32>
    %c0_8 = arith.constant 0 : index
    %17 = arith.index_cast %14 : i32 to index
    %18 = vector.load %arg3[%c0_8, %17] : memref<8x1024xf32, #tpu.memory_space<vmem>>, vector<8x128xf32>
    %19 = arith.subf %16, %18 : vector<8x128xf32>
    %20 = arith.addf %12, %19 : vector<8x128xf32>
    %c2_i32 = arith.constant 2 : i32
    %c128_i32_9 = arith.constant 128 : i32
    %21 = arith.muli %c2_i32, %c128_i32_9 : i32
    %22 = tpu.assume_multiple %21, 128 : i32
    %c0_10 = arith.constant 0 : index
    %23 = arith.index_cast %22 : i32 to index
    %24 = vector.load %arg2[%c0_10, %23] : memref<8x1024xf32, #tpu.memory_space<vmem>>, vector<8x128xf32>
    %c0_11 = arith.constant 0 : index
    %25 = arith.index_cast %22 : i32 to index
    %26 = vector.load %arg3[%c0_11, %25] : memref<8x1024xf32, #tpu.memory_space<vmem>>, vector<8x128xf32>
    %27 = arith.subf %24, %26 : vector<8x128xf32>
    %28 = arith.addf %20, %27 : vector<8x128xf32>
    %c3_i32 = arith.constant 3 : i32
    %c128_i32_12 = arith.constant 128 : i32
    %29 = arith.muli %c3_i32, %c128_i32_12 : i32
    %30 = tpu.assume_multiple %29, 128 : i32
    %c0_13 = arith.constant 0 : index
    %31 = arith.index_cast %30 : i32 to index
    %32 = vector.load %arg2[%c0_13, %31] : memref<8x1024xf32, #tpu.memory_space<vmem>>, vector<8x128xf32>
    %c0_14 = arith.constant 0 : index
    %33 = arith.index_cast %30 : i32 to index
    %34 = vector.load %arg3[%c0_14, %33] : memref<8x1024xf32, #tpu.memory_space<vmem>>, vector<8x128xf32>
    %35 = arith.subf %32, %34 : vector<8x128xf32>
    %36 = arith.addf %28, %35 : vector<8x128xf32>
    %c4_i32 = arith.constant 4 : i32
    %c128_i32_15 = arith.constant 128 : i32
    %37 = arith.muli %c4_i32, %c128_i32_15 : i32
    %38 = tpu.assume_multiple %37, 128 : i32
    %c0_16 = arith.constant 0 : index
    %39 = arith.index_cast %38 : i32 to index
    %40 = vector.load %arg2[%c0_16, %39] : memref<8x1024xf32, #tpu.memory_space<vmem>>, vector<8x128xf32>
    %c0_17 = arith.constant 0 : index
    %41 = arith.index_cast %38 : i32 to index
    %42 = vector.load %arg3[%c0_17, %41] : memref<8x1024xf32, #tpu.memory_space<vmem>>, vector<8x128xf32>
    %43 = arith.subf %40, %42 : vector<8x128xf32>
    %44 = arith.addf %36, %43 : vector<8x128xf32>
    %c5_i32 = arith.constant 5 : i32
    %c128_i32_18 = arith.constant 128 : i32
    %45 = arith.muli %c5_i32, %c128_i32_18 : i32
    %46 = tpu.assume_multiple %45, 128 : i32
    %c0_19 = arith.constant 0 : index
    %47 = arith.index_cast %46 : i32 to index
    %48 = vector.load %arg2[%c0_19, %47] : memref<8x1024xf32, #tpu.memory_space<vmem>>, vector<8x128xf32>
    %c0_20 = arith.constant 0 : index
    %49 = arith.index_cast %46 : i32 to index
    %50 = vector.load %arg3[%c0_20, %49] : memref<8x1024xf32, #tpu.memory_space<vmem>>, vector<8x128xf32>
    %51 = arith.subf %48, %50 : vector<8x128xf32>
    %52 = arith.addf %44, %51 : vector<8x128xf32>
    %c6_i32 = arith.constant 6 : i32
    %c128_i32_21 = arith.constant 128 : i32
    %53 = arith.muli %c6_i32, %c128_i32_21 : i32
    %54 = tpu.assume_multiple %53, 128 : i32
    %c0_22 = arith.constant 0 : index
    %55 = arith.index_cast %54 : i32 to index
    %56 = vector.load %arg2[%c0_22, %55] : memref<8x1024xf32, #tpu.memory_space<vmem>>, vector<8x128xf32>
    %c0_23 = arith.constant 0 : index
    %57 = arith.index_cast %54 : i32 to index
    %58 = vector.load %arg3[%c0_23, %57] : memref<8x1024xf32, #tpu.memory_space<vmem>>, vector<8x128xf32>
    %59 = arith.subf %56, %58 : vector<8x128xf32>
    %60 = arith.addf %52, %59 : vector<8x128xf32>
    %c7_i32 = arith.constant 7 : i32
    %c128_i32_24 = arith.constant 128 : i32
    %61 = arith.muli %c7_i32, %c128_i32_24 : i32
    %62 = tpu.assume_multiple %61, 128 : i32
    %c0_25 = arith.constant 0 : index
    %63 = arith.index_cast %62 : i32 to index
    %64 = vector.load %arg2[%c0_25, %63] : memref<8x1024xf32, #tpu.memory_space<vmem>>, vector<8x128xf32>
    %c0_26 = arith.constant 0 : index
    %65 = arith.index_cast %62 : i32 to index
    %66 = vector.load %arg3[%c0_26, %65] : memref<8x1024xf32, #tpu.memory_space<vmem>>, vector<8x128xf32>
    %67 = arith.subf %64, %66 : vector<8x128xf32>
    %68 = arith.addf %60, %67 : vector<8x128xf32>
    %c8_i32 = arith.constant 8 : i32
    %c0_27 = arith.constant 0 : index
    %c0_28 = arith.constant 0 : index
    %c0_29 = arith.constant 0 : index
    %69 = vector.load %arg4[%c0_27, %c0_28, %c0_29] : memref<1x8x128xf32, #tpu.memory_space<vmem>>, vector<1x8x128xf32>
    %70 = vector.shape_cast %69 : vector<1x8x128xf32> to vector<8x128xf32>
    %71 = vector.shape_cast %68 : vector<8x128xf32> to vector<1x8x128xf32>
    tpu.vector_store %arg4[%c0_27, %c0_28, %c0_29], %71 {strides = array<i32>} : memref<1x8x128xf32, #tpu.memory_space<vmem>>, vector<1x8x128xf32>,
    return
  }
  func.func @transform_0(%arg0: i32, %arg1: i32) -> (i32, i32) {
    %c1_i32 = arith.constant 1 : i32
    %0 = arith.muli %arg0, %c1_i32 : i32
    %1 = arith.addi %0, %arg1 : i32
    %c0_i32 = arith.constant 0 : i32
    %2 = arith.minsi %1, %c0_i32 : i32
    %c0_i32_0 = arith.constant 0 : i32
    %c0_i32_1 = arith.constant 0 : i32
    return %c0_i32_0, %2 : i32, i32
  }
  func.func @transform_1(%arg0: i32, %arg1: i32) -> (i32, i32) {
    %c1_i32 = arith.constant 1 : i32
    %0 = arith.muli %arg0, %c1_i32 : i32
    %1 = arith.addi %0, %arg1 : i32
    %c0_i32 = arith.constant 0 : i32
    %2 = arith.minsi %1, %c0_i32 : i32
    %c0_i32_0 = arith.constant 0 : i32
    %c0_i32_1 = arith.constant 0 : i32
    return %c0_i32_0, %2 : i32, i32
  }
  func.func @transform_2(%arg0: i32, %arg1: i32) -> (i32, i32, i32) {
    %c0_i32 = arith.constant 0 : i32
    %c0_i32_0 = arith.constant 0 : i32
    %c0_i32_1 = arith.constant 0 : i32
    return %arg0, %c0_i32, %c0_i32_0 : i32, i32, i32
  }
}

</mosaic_0001>

<bundles_post_ra>
// kernel: tpu_custom_call.1
= control target key start
LH: loop header
LB: loop body
LE: loop exit
PB: predicated region body
PF: predicated region fallthrough
CT: control target
= control target key end

     0   :  { %7 = vsyncpa [#allocation3], 0  ;;  %s244_s0 = inlined_call_operand.hbm [shape: f32[8,1024], index: 0, kind: input, shape index: {}]   ;;  %s245_s1 = inlined_call_operand.hbm [shape: f32[8,1024], index: 1, kind: input, shape index: {}]   ;;  %s246_s2 = inlined_call_operand.hbm [shape: f32[1,8,128], index: 2, kind: output, shape index: {}]  }
   0x1   :  { %8 = vsyncpa [#allocation6], 0 }
   0x2   :  { %9 = vsyncpa [#allocation4], 0  ;;  %s21_s11 = sshll.u32 %s244_s0, 4  ;;  %s217_s12 = smov [#allocation2]   ;;  %s22_s11 = int_to_ptr.hbm [resolvable:$true] %s21_s11 }
   0x3   :  { %s23_s13 = sshll.u32 %s217_s12, 4  ;;  %s38_s16 = sshll.u32 %s245_s1, 4  ;;  %s24_s13 = int_to_ptr.vmem [resolvable:$true] %s23_s13  ;;  %s39_s16 = int_to_ptr.hbm [resolvable:$true] %s38_s16 }
   0x4   :  { %26 = dma.hbm_to_vmem [thread:$0]  %s22_s11, 1024, %s24_s13, [#allocation3]  }
   0x5   :  { %s218_s17 = smov [#allocation5]  }
   0x6   :  { %s40_s18 = sshll.u32 %s218_s17, 4  ;;  %s41_s18 = int_to_ptr.vmem [resolvable:$true] %s40_s18 }
   0x7   :  { %43 = dma.hbm_to_vmem [thread:$0]  %s39_s16, 1024, %s41_s18, [#allocation6]  }
   0x8   :  { %211 = dma.done.wait [#allocation3], 1024  }
   0x9   :  { %212 = vsyncadd [#allocation3], 4294966272 }
   0xa   :  { %213 = dma.done.wait [#allocation6], 1024  }
   0xb   :  { %214 = vsyncadd [#allocation6], 4294966272  ;;  %v66_v0 = vld [vmem:[#allocation2] sm:$0xff]  ;;  %v71_v2 = vld [vmem:[#allocation2 + $0x8] sm:$0xff]  ;;  %s219_s0 = smov [#allocation7]   ;;  %s120_s21 = sshll.u32 %s246_s2, 4  ;;  %s121_s21 = int_to_ptr.hbm [resolvable:$true] %s120_s21 }
   0xc   :  { %v67_v1 = vld [vmem:[#allocation5] sm:$0xff]  ;;  %v73_v4 = vld [vmem:[#allocation5 + $0x8] sm:$0xff]  ;;  %v77_v5 = vld [vmem:[#allocation2 + $0x10] sm:$0xff]  ;;  %s118_s1 = sshll.u32 %s219_s0, 4  ;;  %s119_s1 = int_to_ptr.vmem [resolvable:$true] %s118_s1 }
   0xd   :  { %v68_v3 = vsub.f32 %v66_v0, %v67_v1  ;;  %v79_v6 = vld [vmem:[#allocation5 + $0x10] sm:$0xff]  ;;  %v74_v7 = vsub.f32 %v71_v2, %v73_v4  ;;  %v83_v8 = vld [vmem:[#allocation2 + $0x18] sm:$0xff]  ;;  %v89_v11 = vld [vmem:[#allocation2 + $0x20] sm:$0xff] }
   0xe   :  { %v85_v9 = vld [vmem:[#allocation5 + $0x18] sm:$0xff]  ;;  %v80_v10 = vsub.f32 %v77_v5, %v79_v6  ;;  %v91_v12 = vld [vmem:[#allocation5 + $0x20] sm:$0xff]  ;;  %v95_v15 = vld [vmem:[#allocation2 + $0x28] sm:$0xff] }
   0xf   :  { %v75_v13 = vadd.f32 %v74_v7, %v68_v3  ;;  %v86_v14 = vsub.f32 %v83_v8, %v85_v9  ;;  %v97_v16 = vld [vmem:[#allocation5 + $0x28] sm:$0xff]  ;;  %v92_v18 = vsub.f32 %v89_v11, %v91_v12  ;;  %v101_v19 = vld [vmem:[#allocation2 + $0x30] sm:$0xff]  ;;  %v107_v23 = vld [vmem:[#allocation2 + $0x38] sm:$0xff] }
  0x10   :  { %v103_v20 = vld [vmem:[#allocation5 + $0x30] sm:$0xff]  ;;  %v98_v22 = vsub.f32 %v95_v15, %v97_v16  ;;  %v109_v24 = vld [vmem:[#allocation5 + $0x38] sm:$0xff] }
  0x11   :  { %v81_v17 = vadd.f32 %v80_v10, %v75_v13  ;;  %v104_v26 = vsub.f32 %v101_v19, %v103_v20  ;;  %v110_v28 = vsub.f32 %v107_v23, %v109_v24 }
  0x13   :  { %v87_v21 = vadd.f32 %v86_v14, %v81_v17 }
  0x15   :  { %v93_v25 = vadd.f32 %v92_v18, %v87_v21 }
  0x17   :  { %v99_v27 = vadd.f32 %v98_v22, %v93_v25 }
  0x19   :  { %v105_v29 = vadd.f32 %v104_v26, %v99_v27 }
  0x1b   :  { %v111_v30 = vadd.f32 %v110_v28, %v105_v29 }
  0x1d   :  { %112 = vst [vmem:[#allocation7] sm:$0xff] %v111_v30 }
  0x1e   :  { %123 = dma.vmem_to_hbm [thread:$0]  %s119_s1, 128, %s121_s21, [#allocation4]  }
  0x1f   :  { %215 = dma.done.wait [#allocation4], 128  }
  0x20   :  { %216 = vsyncadd [#allocation4], 4294967168 }
  0x21   :  { %128 = vsyncpa [#allocation3], 1 }
  0x22   :  { %129 = vsyncpa [#allocation6], 1 }
  0x23   :  { %130 = vsyncpa [#allocation4], 1 }

</bundles_post_ra>
